<compile_context>
chip_gen: v6e
topology: v6e:2x2x1
jax: 0.10.0
libtpu: 0.0.40
codegen_flags: <defaults>
</compile_context>

<pallas_src>
import functools

import jax
import jax.numpy as jnp
from jax import lax
from jax.experimental import pallas as pl
from jax.experimental.pallas import tpu as pltpu


# ----------------------------------------------------------------------------
# Kernels
# ----------------------------------------------------------------------------

def _softmax_dim0_kernel(x_ref, o_ref):
    """One-pass path: the whole reduced (dim-0) axis lives inside the block."""
    e = jnp.exp(x_ref[...].astype(jnp.float32))          # EUP
    denom = jnp.sum(e, axis=0, keepdims=True)             # XLU column sum
    inv = pl.reciprocal(denom, approx=False)               # exact (1e-5 tol)
    o_ref[...] = (e * inv).astype(o_ref.dtype)             # VPU broadcast mul


def _denom_kernel(x_ref, denom_ref, *, n_rows, tn):
    """Two-pass (tall N), pass 1: accumulate per-column sum(exp) over N blocks."""
    ni = pl.program_id(1)

    @pl.when(ni == 0)
    def _():
        denom_ref[...] = jnp.zeros_like(denom_ref)

    e = jnp.exp(x_ref[...].astype(jnp.float32))
    # Mask rows past the true N: the boundary block's tail holds stale VMEM
    # data that must not contribute to any column's denominator.
    row = ni * tn + lax.broadcasted_iota(jnp.int32, e.shape, 0)
    e = jnp.where(row < n_rows, e, 0.0)
    denom_ref[...] += jnp.sum(e, axis=0, keepdims=True)


def _scale_kernel(x_ref, denom_ref, o_ref):
    """Two-pass, pass 2: exp(x) * (1/denom).  Out-of-range rows/cols are masked on store."""
    e = jnp.exp(x_ref[...].astype(jnp.float32))
    inv = pl.reciprocal(denom_ref[...], approx=False)
    o_ref[...] = (e * inv).astype(o_ref.dtype)


# ----------------------------------------------------------------------------
# Tiling helpers
# ----------------------------------------------------------------------------

def _round_up(v: int, m: int) -> int:
    return -(-v // m) * m


def _vmem_budget_bytes():
    """Chip-derived VMEM budget (~3/4 of physical) and the physical capacity."""
    try:
        cap = int(pltpu.get_tpu_info().vmem_capacity_bytes)
    except Exception:
        cap = 64 << 20                       # conservative (v7x-sized) fallback
    return (cap * 3) // 4, cap               # ~48 MiB on v7x, ~96 MiB on v5e/v6e


def _bytes_per_lane(rows: int, itemsize: int) -> int:
    # 2x input + 2x output double-buffers at the I/O itemsize, plus ~2 f32
    # compute intermediates (exp result, scaled result) -> dtype-aware estimate.
    return rows * (4 * itemsize + 8)


def _choose_lane_tile(n_rows: int, d_pad: int, itemsize: int, vmem_budget: int) -> int:
    bpl = _bytes_per_lane(n_rows, itemsize)
    # Largest lane tile (multiple of 128) that fits the VMEM budget.
    td_vmem = max(128, (vmem_budget // bpl) // 128 * 128)
    # Target ~4 MiB of *input* per block so the per-grid-step overhead is
    # amortized; for short N this is tens of thousands of lanes.
    target_in = 4 << 20
    td_target = max(128, (target_in // max(1, n_rows * itemsize)) // 128 * 128)
    td = min(td_vmem, td_target, d_pad)

    # Keep >=2 (ideally 4) lane blocks when the data is big enough so v7x's two
    # TensorCores both get work; never shrink a block below ~2 MiB of input.
    min_block_in = 2 << 20
    for parts in (4, 2):
        if -(-d_pad // td) >= parts:
            break
        td_p = _round_up(-(-d_pad // parts), 128)
        if td_p >= 128 and n_rows * td_p * itemsize >= min_block_in:
            td = td_p
            break
    return td


# ----------------------------------------------------------------------------
# pallas_call wrappers
# ----------------------------------------------------------------------------

def _softmax_one_pass(xp: jax.Array, td: int, vmem_limit: int) -> jax.Array:
    n, d = xp.shape                                   # d is a multiple of 128
    gd = -(-d // td)
    return pl.pallas_call(
        _softmax_dim0_kernel,
        out_shape=jax.ShapeDtypeStruct((n, d), xp.dtype),
        grid_spec=pltpu.PrefetchScalarGridSpec(
            num_scalar_prefetch=0,
            grid=(gd,),
            in_specs=[pl.BlockSpec((n, td), lambda j: (0, j))],
            out_specs=pl.BlockSpec((n, td), lambda j: (0, j)),
        ),
        compiler_params=pltpu.CompilerParams(
            dimension_semantics=("parallel",),
            vmem_limit_bytes=vmem_limit,
        ),
    )(xp)


def _softmax_two_pass(xp: jax.Array, tn: int, td: int, vmem_limit: int) -> jax.Array:
    """Tall-N path: accumulate per-column denom over an 'arbitrary' N axis, then rescale."""
    n, d = xp.shape                                   # d is a multiple of 128
    gd = -(-d // td)
    gn = -(-n // tn)

    denom = pl.pallas_call(
        functools.partial(_denom_kernel, n_rows=n, tn=tn),
        out_shape=jax.ShapeDtypeStruct((1, d), jnp.float32),
        grid_spec=pltpu.PrefetchScalarGridSpec(
            num_scalar_prefetch=0,
            grid=(gd, gn),
            in_specs=[pl.BlockSpec((tn, td), lambda j, i: (i, j))],
            out_specs=pl.BlockSpec((1, td), lambda j, i: (0, j)),
        ),
        compiler_params=pltpu.CompilerParams(
            dimension_semantics=("parallel", "arbitrary"),
            vmem_limit_bytes=vmem_limit,
        ),
    )(xp)

    return pl.pallas_call(
        _scale_kernel,
        out_shape=jax.ShapeDtypeStruct((n, d), xp.dtype),
        grid_spec=pltpu.PrefetchScalarGridSpec(
            num_scalar_prefetch=0,
            grid=(gd, gn),
            in_specs=[pl.BlockSpec((tn, td), lambda j, i: (i, j)),
                      pl.BlockSpec((1, td), lambda j, i: (0, j))],
            out_specs=pl.BlockSpec((tn, td), lambda j, i: (i, j)),
        ),
        compiler_params=pltpu.CompilerParams(
            dimension_semantics=("parallel", "parallel"),
            vmem_limit_bytes=vmem_limit,
        ),
    )(xp, denom)


def my_softmax(x: jax.Array) -> jax.Array:
    """exp(x) / sum(exp(x), axis=0), matching the PyTorch module semantics."""
    assert x.ndim == 2, "kernel expects a 2-D [N, D] input"
    n, d = x.shape
    itemsize = jnp.dtype(x.dtype).itemsize

    vmem_budget, vmem_cap = _vmem_budget_bytes()
    vmem_limit = int(min(vmem_cap, vmem_budget + (8 << 20)))

    # Lane (dim-1) padding: only to the next multiple of 128, never to a
    # multiple of the lane tile.  The reduced axis (dim 0) is never padded.
    d_pad = _round_up(d, 128)
    xp = x if d_pad == d else jnp.pad(x, ((0, 0), (0, d_pad - d)))

    # One pass while a full-N block of >=256 lanes fits VMEM (below that the
    # one-pass bandwidth drops under the two-pass effective bandwidth).
    if _bytes_per_lane(n, itemsize) * 256 <= vmem_budget:
        td = _choose_lane_tile(n, d_pad, itemsize, vmem_budget)
        out = _softmax_one_pass(xp, td, vmem_limit)
    else:
        td = min(512, d_pad)
        tn = max(8, (vmem_budget // (_bytes_per_lane(1, itemsize) * td)) // 8 * 8)
        tn = int(min(tn, 2048))
        if tn >= n:
            tn = n
        out = _softmax_two_pass(xp, tn, td, vmem_limit)

    if d_pad != d:
        out = out[:, :d]
    return out


# ----------------------------------------------------------------------------
# Reference + self-test
# ----------------------------------------------------------------------------

def _ref_softmax_dim0_f32(x):
    xf = x.astype(jnp.float32)
    return jnp.exp(xf) / jnp.sum(jnp.exp(xf), axis=0)


def _check(out, x, tol):
    ref = _ref_softmax_dim0_f32(x)
    ok = (out.shape == x.shape)
    ok &= bool(jnp.allclose(out.astype(jnp.float32), ref, atol=tol, rtol=tol))
    ok &= bool(jnp.allclose(jnp.sum(out.astype(jnp.float32), axis=0), 1.0, atol=tol))
    return ok


if __name__ == "__main__":
    key = jax.random.PRNGKey(0)
    k1, k2, k3, k4, k5, k6 = jax.random.split(key, 6)
    ok = True

    # Aligned shape, single big lane block (byte-target tiling).
    x_main = jax.random.normal(k1, (8, 1024), dtype=jnp.float32)
    out = jax.block_until_ready(my_softmax(x_main))
    ok &= out.dtype == x_main.dtype and _check(out, x_main, 1e-5)

    # Ragged case: N=12 (no pad needed), D=200 (padded to 256 only).
    x_ragged = jax.random.normal(k2, (12, 200), dtype=jnp.float32)
    out = jax.block_until_ready(my_softmax(x_ragged))
    ok &= out.dtype == x_ragged.dtype and _check(out, x_ragged, 1e-5)

    # Tiny case.
    x_tiny = jax.random.normal(k3, (8, 128), dtype=jnp.float32)
    out = jax.block_until_ready(my_softmax(x_tiny))
    ok &= out.dtype == x_tiny.dtype and _check(out, x_tiny, 1e-5)

    # bf16 case: exercises the dtype-aware tile sizing (f32 math inside).
    x_bf16 = jax.random.normal(k4, (32, 512)).astype(jnp.bfloat16)
    out = jax.block_until_ready(my_softmax(x_bf16))
    ok &= out.dtype == x_bf16.dtype and _check(out, x_bf16, 2e-2)

    # Direct test of the partial-last-lane-block path (td=512 over D=1280).
    _, vmem_cap = _vmem_budget_bytes()
    x_part = jax.random.normal(k5, (8, 1280), dtype=jnp.float32)
    out = jax.block_until_ready(
        _softmax_one_pass(x_part, 512, min(vmem_cap, 48 << 20)))
    ok &= _check(out, x_part, 1e-5)

    # Direct test of the two-pass tall-N path (small forced tiles, ragged N blocks).
    x_tall = jax.random.normal(k6, (40, 384), dtype=jnp.float32)
    out = jax.block_until_ready(
        _softmax_two_pass(x_tall, tn=16, td=128, vmem_limit=min(vmem_cap, 48 << 20)))
    ok &= _check(out, x_tall, 1e-5)

    assert ok
    print("KERNEL_OK")
</pallas_src>

<mosaic_0001>
module attributes {stable_mosaic.version = 11 : i64} {
  func.func @_softmax_dim0_kernel(%arg0: i32, %arg1: memref<8x1024xf32, #tpu.memory_space<vmem>>, %arg2: memref<8x1024xf32, #tpu.memory_space<vmem>>) attributes {dimension_semantics = [#tpu.dimension_semantics<parallel>], iteration_bounds = array<i64: 1>, scalar_prefetch = 0 : i64, scratch_operands = 0 : i64, tpu.core_type = #tpu.core_type<tc>, window_params = [{transform_indices = @transform_0, window_bounds = array<i64: 8, 1024>}, {transform_indices = @transform_1, window_bounds = array<i64: 8, 1024>}]} {
    %c0 = arith.constant 0 : index
    %c0_0 = arith.constant 0 : index
    %0 = vector.load %arg1[%c0, %c0_0] : memref<8x1024xf32, #tpu.memory_space<vmem>>, vector<8x1024xf32>
    %1 = math.exp %0 : vector<8x1024xf32>
    %cst = arith.constant dense<0.000000e+00> : vector<1024xf32>
    %2 = vector.multi_reduction <add>, %1, %cst [0] : vector<8x1024xf32> to vector<1024xf32>
    %3 = vector.shape_cast %2 : vector<1024xf32> to vector<1x1024xf32>
    %4 = tpu.reciprocal %3 : vector<1x1024xf32> -> vector<1x1024xf32>
    %5 = vector.broadcast %4 : vector<1x1024xf32> to vector<8x1024xf32>
    %6 = arith.mulf %1, %5 : vector<8x1024xf32>
    %c0_1 = arith.constant 0 : index
    %c0_2 = arith.constant 0 : index
    %7 = vector.load %arg2[%c0_1, %c0_2] : memref<8x1024xf32, #tpu.memory_space<vmem>>, vector<8x1024xf32>
    tpu.vector_store %arg2[%c0_1, %c0_2], %6 {strides = array<i32>} : memref<8x1024xf32, #tpu.memory_space<vmem>>, vector<8x1024xf32>,
    return
  }
  func.func @transform_0(%arg0: i32) -> (i32, i32) {
    %c0_i32 = arith.constant 0 : i32
    %c0_i32_0 = arith.constant 0 : i32
    return %c0_i32, %arg0 : i32, i32
  }
  func.func @transform_1(%arg0: i32) -> (i32, i32) {
    %c0_i32 = arith.constant 0 : i32
    %c0_i32_0 = arith.constant 0 : i32
    return %c0_i32, %arg0 : i32, i32
  }
}

</mosaic_0001>

<bundles_post_ra>
// kernel: tpu_custom_call.1
= control target key start
LH: loop header
LB: loop body
LE: loop exit
PB: predicated region body
PF: predicated region fallthrough
CT: control target
= control target key end

     0   :  { %6 = vsyncpa [#allocation3], 0  ;;  %s268_s0 = inlined_call_operand.hbm [shape: f32[8,1024], index: 0, kind: input, shape index: {}]   ;;  %s269_s1 = inlined_call_operand.hbm [shape: f32[8,1024], index: 1, kind: output, shape index: {}]  }
   0x1   :  { %7 = vsyncpa [#allocation4], 0  ;;  %s210_s6 = smov [#allocation2]  }
   0x2   :  { %s14_s7 = sshll.u32 %s210_s6, 4  ;;  %s15_s7 = int_to_ptr.vmem [resolvable:$true] %s14_s7 }
   0x3   :  { %s174_s8 = scalar_lea.vmem %s15_s7, 1024  ;;  %p179_p1 = scmp.lt.s32.totalorder %s15_s7, %s15_s7 }
   0x4   :  { %p175_p0 = scmp.ne.s32.totalorder %s15_s7, %s174_s8  ;;  %p180_p2 = scmp.lt.s32.totalorder %s174_s8, %s174_s8 }
   0x6   :  { %p181_p3 = por %p180_p2, %p179_p1 }
   0x8   :  { %p182_p4 = pnand %p181_p3, %p175_p0 }
   0xa   :  { %185 = shalt.err (!%p182_p4)
}
   0xb   :  { %17 = dma.hbm_to_vmem [thread:$0]  %s268_s0, 1024, %s15_s7, [#allocation3]  }
   0xc   :  { %206 = dma.done.wait [#allocation3], 1024  }
   0xd   :  { %207 = vsyncadd [#allocation3], 4294966272  ;;  %v21_v0 = vld [vmem:[#allocation2] sm:$0xff]  ;;  %v22_v1 = vld [vmem:[#allocation2 + $0x8] sm:$0xff]  ;;  %s211_s0 = smov [#allocation5]  }
   0xe   :  { %v23_v2 = vld [vmem:[#allocation2 + $0x10] sm:$0xff]  ;;  %v29_v3 = vmul.f32 1.442695, %v21_v0  ;;  %v31_v4 = vmul.f32 1.442695, %v22_v1  ;;  %v24_v6 = vld [vmem:[#allocation2 + $0x18] sm:$0xff] }
   0xf   :  { %v33_v5 = vmul.f32 1.442695, %v23_v2  ;;  %v25_v7 = vld [vmem:[#allocation2 + $0x20] sm:$0xff]  ;;  %v26_v8 = vld [vmem:[#allocation2 + $0x28] sm:$0xff]  ;;  %v35_v9 = vmul.f32 1.442695, %v24_v6 }
  0x10   :  { %134 = vpow2.f32 %v29_v3  ;;  %v37_v10 = vmul.f32 1.442695, %v25_v7  ;;  %v39_v11 = vmul.f32 1.442695, %v26_v8  ;;  %v27_v12 = vld [vmem:[#allocation2 + $0x30] sm:$0xff]  ;;  %v28_v13 = vld [vmem:[#allocation2 + $0x38] sm:$0xff] }
  0x11   :  { %136 = vpow2.f32 %v31_v4  ;;  %v41_v14 = vmul.f32 1.442695, %v27_v12  ;;  %v43_v15 = vmul.f32 1.442695, %v28_v13  ;;  %s123_s11 = sshll.u32 %s211_s0, 4  ;;  %s124_s11 = int_to_ptr.vmem [resolvable:$true] %s123_s11 }
  0x12   :  { %138 = vpow2.f32 %v33_v5  ;;  %s186_s12 = scalar_lea.vmem %s124_s11, 1024  ;;  %p191_p6 = scmp.lt.s32.totalorder %s124_s11, %s124_s11 }
  0x13   :  { %140 = vpow2.f32 %v35_v9  ;;  %p187_p5 = scmp.ne.s32.totalorder %s124_s11, %s186_s12  ;;  %p192_p7 = scmp.lt.s32.totalorder %s186_s12, %s186_s12 }
  0x14   :  { %142 = vpow2.f32 %v37_v10 }
  0x15   :  { %144 = vpow2.f32 %v39_v11  ;;  %p193_p8 = por %p192_p7, %p191_p6 }
  0x16   :  { %146 = vpow2.f32 %v41_v14 }
  0x17   :  { %148 = vpow2.f32 %v43_v15  ;;  %p194_p9 = pnand %p193_p8, %p187_p5 }
  0x1d   :  { %v225_v16 = vpop.eup %134 }
  0x1e   :  { %v227_v17 = vpop.eup %136  ;;  %v45_v18 = vrot.slane %v225_v16, 4 }
  0x1f   :  { %v230_v19 = vpop.eup %138  ;;  %v51_v20 = vrot.slane %v227_v17, 4 }
  0x20   :  { %v233_v21 = vpop.eup %140  ;;  %v46_v22 = vadd.f32 %v225_v16, %v45_v18  ;;  %v57_v23 = vrot.slane %v230_v19, 4 }
  0x21   :  { %v237_v24 = vpop.eup %142  ;;  %v52_v25 = vadd.f32 %v227_v17, %v51_v20  ;;  %v63_v26 = vrot.slane %v233_v21, 4 }
  0x22   :  { %v241_v27 = vpop.eup %144  ;;  %v47_v28 = vrot.slane %v46_v22, 2  ;;  %v58_v29 = vadd.f32 %v230_v19, %v57_v23  ;;  %v69_v30 = vrot.slane %v237_v24, 4 }
  0x23   :  { %v245_v31 = vpop.eup %146  ;;  %v53_v32 = vrot.slane %v52_v25, 2  ;;  %v64_v33 = vadd.f32 %v233_v21, %v63_v26  ;;  %v75_v34 = vrot.slane %v241_v27, 4 }
  0x24   :  { %v249_v35 = vpop.eup %148  ;;  %v48_v36 = vadd.f32 %v47_v28, %v46_v22  ;;  %v59_v37 = vrot.slane %v58_v29, 2  ;;  %v70_v38 = vadd.f32 %v237_v24, %v69_v30  ;;  %v81_v39 = vrot.slane %v245_v31, 4 }
  0x25   :  { %v54_v40 = vadd.f32 %v53_v32, %v52_v25  ;;  %v65_v41 = vrot.slane %v64_v33, 2  ;;  %v76_v42 = vadd.f32 %v241_v27, %v75_v34  ;;  %v87_v43 = vrot.slane %v249_v35, 4 }
  0x26   :  { %v49_v44 = vrot.slane %v48_v36, 1  ;;  %v60_v45 = vadd.f32 %v59_v37, %v58_v29  ;;  %v71_v46 = vrot.slane %v70_v38, 2  ;;  %v82_v47 = vadd.f32 %v245_v31, %v81_v39 }
  0x27   :  { %v55_v48 = vrot.slane %v54_v40, 1  ;;  %v66_v49 = vadd.f32 %v65_v41, %v64_v33  ;;  %v77_v50 = vrot.slane %v76_v42, 2  ;;  %v88_v51 = vadd.f32 %v249_v35, %v87_v43 }
  0x28   :  { %v50_v52 = vadd.f32 %v49_v44, %v48_v36  ;;  %v61_v53 = vrot.slane %v60_v45, 1  ;;  %v72_v54 = vadd.f32 %v71_v46, %v70_v38  ;;  %v83_v55 = vrot.slane %v82_v47, 2 }
  0x29   :  { %v56_v56 = vadd.f32 %v55_v48, %v54_v40  ;;  %v67_v57 = vrot.slane %v66_v49, 1  ;;  %v78_v58 = vadd.f32 %v77_v50, %v76_v42  ;;  %v89_v59 = vrot.slane %v88_v51, 2 }
  0x2a   :  { %150 = vrcp.f32 %v50_v52  ;;  %v62_v60 = vadd.f32 %v61_v53, %v60_v45  ;;  %v73_v61 = vrot.slane %v72_v54, 1  ;;  %v84_v62 = vadd.f32 %v83_v55, %v82_v47 }
  0x2b   :  { %152 = vrcp.f32 %v56_v56  ;;  %v68_v63 = vadd.f32 %v67_v57, %v66_v49  ;;  %v79_v0 = vrot.slane %v78_v58, 1  ;;  %v90_v1 = vadd.f32 %v89_v59, %v88_v51 }
  0x2c   :  { %154 = vrcp.f32 %v62_v60  ;;  %v74_v2 = vadd.f32 %v73_v61, %v72_v54  ;;  %v85_v3 = vrot.slane %v84_v62, 1 }
  0x2d   :  { %156 = vrcp.f32 %v68_v63  ;;  %v80_v4 = vadd.f32 %v79_v0, %v78_v58  ;;  %v91_v5 = vrot.slane %v90_v1, 1 }
  0x2e   :  { %158 = vrcp.f32 %v74_v2  ;;  %v86_v6 = vadd.f32 %v85_v3, %v84_v62 }
  0x2f   :  { %160 = vrcp.f32 %v80_v4  ;;  %v92_v7 = vadd.f32 %v91_v5, %v90_v1 }
  0x30   :  { %162 = vrcp.f32 %v86_v6 }
  0x31   :  { %164 = vrcp.f32 %v92_v7 }
  0x37   :  { %v151_v8 = vpop.eup %150 }
  0x38   :  { %v153_v9 = vpop.eup %152  ;;  %v101_v10 = vmul.f32 %v151_v8, %v225_v16 }
  0x39   :  { %v155_v11 = vpop.eup %154  ;;  %v102_v12 = vmul.f32 %v153_v9, %v227_v17 }
  0x3a   :  { %v157_v13 = vpop.eup %156  ;;  %109 = vst [vmem:[#allocation5] sm:$0xff] %v101_v10  ;;  %v103_v14 = vmul.f32 %v155_v11, %v230_v19 }
  0x3b   :  { %v159_v15 = vpop.eup %158  ;;  %110 = vst [vmem:[#allocation5 + $0x8] sm:$0xff] %v102_v12  ;;  %v104_v18 = vmul.f32 %v157_v13, %v233_v21 }
  0x3c   :  { %v161_v20 = vpop.eup %160  ;;  %111 = vst [vmem:[#allocation5 + $0x10] sm:$0xff] %v103_v14  ;;  %v105_v22 = vmul.f32 %v159_v15, %v237_v24 }
  0x3d   :  { %v163_v23 = vpop.eup %162  ;;  %112 = vst [vmem:[#allocation5 + $0x18] sm:$0xff] %v104_v18  ;;  %v106_v16 = vmul.f32 %v161_v20, %v241_v27 }
  0x3e   :  { %v165_v25 = vpop.eup %164  ;;  %113 = vst [vmem:[#allocation5 + $0x20] sm:$0xff] %v105_v22  ;;  %v107_v17 = vmul.f32 %v163_v23, %v245_v31 }
  0x3f   :  { %114 = vst [vmem:[#allocation5 + $0x28] sm:$0xff] %v106_v16  ;;  %v108_v19 = vmul.f32 %v165_v25, %v249_v35 }
  0x40   :  { %115 = vst [vmem:[#allocation5 + $0x30] sm:$0xff] %v107_v17 }
  0x41   :  { %116 = vst [vmem:[#allocation5 + $0x38] sm:$0xff] %v108_v19 }
  0x42   :  { %197 = shalt.err (!%p194_p9)
}
  0x43   :  { %126 = dma.vmem_to_hbm [thread:$0]  %s124_s11, 1024, %s269_s1, [#allocation4]  }
  0x44   :  { %208 = dma.done.wait [#allocation4], 1024  }
  0x45   :  { %209 = vsyncadd [#allocation4], 4294966272 }
  0x46   :  { %130 = vsyncpa [#allocation3], 1 }
  0x47   :  { %131 = vsyncpa [#allocation4], 1 }

</bundles_post_ra>
